<compile_context>
chip_gen: v7x
topology: tpu7x:2x2x1
jax: 0.10.0
libtpu: 0.0.40
codegen_flags: <defaults>
</compile_context>

<pallas_src>
import jax
import jax.numpy as jnp
from jax.experimental import pallas as pl
from jax.experimental.pallas import tpu as pltpu


def _round_up(n, m):
    return ((n + m - 1) // m) * m


def _diversity_policy_kernel(x_ref, w_ref, b_ref, out_ref):
    # x_ref:   (TB, PAD)        compute dtype (f32 or bf16)
    # w_ref:   (3, PAD, PAD)    compute dtype, pre-transposed to (in, out)
    # b_ref:   (3, PAD)         float32 (biases kept in f32 for the accumulator)
    # out_ref: (TB, PAD)        float32, lane-dense output slab
    cdtype = w_ref.dtype
    b = b_ref[...]                                   # (3, PAD) f32

    # --- feature extractor: features = relu(x @ Wf + bf) -------------------
    x = x_ref[...]
    feats = jnp.dot(x, w_ref[0], preferred_element_type=jnp.float32)
    feats = jnp.maximum(feats + b[0][None, :], 0.0)

    # --- PolicyLayer.comb_layer1: comb1 = relu(features @ W1 + b1) ---------
    comb1 = jnp.dot(feats.astype(cdtype), w_ref[1],
                    preferred_element_type=jnp.float32)
    comb1 = jnp.maximum(comb1 + b[1][None, :], 0.0)

    # --- PolicyLayer.action_layer: logits = comb1 @ W2 + b2 ----------------
    logits = jnp.dot(comb1.astype(cdtype), w_ref[2],
                     preferred_element_type=jnp.float32)
    out_ref[...] = (logits + b[2][None, :]).astype(out_ref.dtype)


def diversity_policy_forward(x, params, *, compute_dtype=jnp.bfloat16,
                             block_b=256):
    """x: (B, obs_dim) float32.  params: dict of PyTorch-convention weights."""
    B, obs_dim = x.shape
    model_features = params["w_feat"].shape[0]
    num_actions = params["w_action"].shape[0]

    # Lane-dense padding: every feature/action axis is padded to a multiple
    # of 128 so the MXU sees full tiles and stores are unmasked.
    PAD = _round_up(max(obs_dim, model_features, num_actions), 128)

    def pad_wt(w):
        # PyTorch weight (out, in) -> transposed (in, out), zero-padded.
        wt = w.T
        return jnp.zeros((PAD, PAD), jnp.float32).at[
            : wt.shape[0], : wt.shape[1]].set(wt)

    def pad_b(bvec):
        return jnp.zeros((PAD,), jnp.float32).at[: bvec.shape[0]].set(bvec)

    # Pack all weights into one slab, all biases into one tile (fewer DMAs).
    w_packed = jnp.stack([pad_wt(params["w_feat"]),
                          pad_wt(params["w_comb1"]),
                          pad_wt(params["w_action"])]).astype(compute_dtype)
    b_packed = jnp.stack([pad_b(params["b_feat"]),
                          pad_b(params["b_comb1"]),
                          pad_b(params["b_action"])])          # f32 (3, PAD)

    # Batch tiling: up to `block_b` rows per grid step, batch padded to a
    # multiple of the tile (padded rows are zero and sliced off afterwards).
    TB = min(block_b, _round_up(B, 8))
    B_pad = _round_up(B, TB)
    x_pad = jnp.zeros((B_pad, PAD), compute_dtype).at[
        :B, :obs_dim].set(x.astype(compute_dtype))

    grid = (B_pad // TB,)
    out = pl.pallas_call(
        _diversity_policy_kernel,
        out_shape=jax.ShapeDtypeStruct((B_pad, PAD), jnp.float32),
        grid=grid,
        in_specs=[
            # Activations: blocked along the batch axis.
            pl.BlockSpec((TB, PAD), lambda i: (i, 0)),
            # Weights / biases: grid-invariant, stay resident in VMEM.
            pl.BlockSpec((3, PAD, PAD), lambda i: (0, 0, 0)),
            pl.BlockSpec((3, PAD), lambda i: (0, 0)),
        ],
        out_specs=pl.BlockSpec((TB, PAD), lambda i: (i, 0)),
        compiler_params=pltpu.CompilerParams(
            dimension_semantics=("parallel",)),
    )(x_pad, w_packed, b_packed)

    return out[:B, :num_actions]


def init_params(key, obs_dim, model_features, num_actions):
    """Deterministic synthetic init (PyTorch Linear shapes: weight=(out,in))."""
    ks = jax.random.split(key, 6)

    def lin(kw, kb, out_f, in_f):
        bound = 1.0 / jnp.sqrt(in_f)
        w = jax.random.uniform(kw, (out_f, in_f), jnp.float32, -bound, bound)
        b = jax.random.uniform(kb, (out_f,), jnp.float32, -bound, bound)
        return w, b

    w_feat, b_feat = lin(ks[0], ks[1], model_features, obs_dim)
    w_comb1, b_comb1 = lin(ks[2], ks[3], model_features, model_features)
    w_action, b_action = lin(ks[4], ks[5], num_actions, model_features)
    return dict(w_feat=w_feat, b_feat=b_feat,
                w_comb1=w_comb1, b_comb1=b_comb1,
                w_action=w_action, b_action=b_action)


def reference_forward(x, params):
    feats = jnp.maximum(x @ params["w_feat"].T + params["b_feat"], 0.0)
    comb1 = jnp.maximum(feats @ params["w_comb1"].T + params["b_comb1"], 0.0)
    return comb1 @ params["w_action"].T + params["b_action"]


if __name__ == "__main__":
    key = jax.random.PRNGKey(0)
    k_obs, k_par = jax.random.split(key)

    # num_targets is carried by the module but unused in forward().
    B, obs_dim, model_features, num_actions = 512, 32, 32, 8

    observation = jax.random.normal(k_obs, (B, obs_dim), jnp.float32)
    params = init_params(k_par, obs_dim, model_features, num_actions)

    ref = reference_forward(observation, params)

    # obs_preproc == identity here.
    # TODO(synk): model_fn() is user-supplied in the original module; a
    # single-Linear+ReLU feature extractor stands in for it.

    # f32 path (exact semantics of the PyTorch module).
    logits_f32 = diversity_policy_forward(observation, params,
                                          compute_dtype=jnp.float32)
    logits_f32 = jax.block_until_ready(logits_f32)
    assert logits_f32.shape == (B, num_actions)
    assert jnp.allclose(logits_f32, ref, atol=1e-4, rtol=1e-4)

    # bf16 inputs/weights with f32 accumulation (v6e/v7x MXU fast path).
    logits_bf16 = diversity_policy_forward(observation, params,
                                           compute_dtype=jnp.bfloat16)
    logits_bf16 = jax.block_until_ready(logits_bf16)
    assert logits_bf16.shape == (B, num_actions)
    assert jnp.allclose(logits_bf16, ref, atol=5e-2, rtol=5e-2)

    print("KERNEL_OK")
</pallas_src>

<mosaic_0001>
module attributes {stable_mosaic.version = 11 : i64} {
  func.func @_diversity_policy_kernel(%arg0: i32, %arg1: memref<256x128xf32, #tpu.memory_space<vmem>>, %arg2: memref<3x128x128xf32, #tpu.memory_space<vmem>>, %arg3: memref<3x128xf32, #tpu.memory_space<vmem>>, %arg4: memref<256x128xf32, #tpu.memory_space<vmem>>) attributes {dimension_semantics = [#tpu.dimension_semantics<parallel>], iteration_bounds = array<i64: 2>, scalar_prefetch = 0 : i64, scratch_operands = 0 : i64, tpu.core_type = #tpu.core_type<tc>, window_params = [{transform_indices = @transform_0, window_bounds = array<i64: 256, 128>}, {pipeline_mode = #tpu.pipeline_mode<synchronous>, transform_indices = @transform_1, window_bounds = array<i64: 3, 128, 128>}, {pipeline_mode = #tpu.pipeline_mode<synchronous>, transform_indices = @transform_2, window_bounds = array<i64: 3, 128>}, {transform_indices = @transform_3, window_bounds = array<i64: 256, 128>}]} {
    %c0 = arith.constant 0 : index
    %c0_0 = arith.constant 0 : index
    %0 = vector.load %arg3[%c0, %c0_0] : memref<3x128xf32, #tpu.memory_space<vmem>>, vector<3x128xf32>
    %c0_1 = arith.constant 0 : index
    %c0_2 = arith.constant 0 : index
    %1 = vector.load %arg1[%c0_1, %c0_2] : memref<256x128xf32, #tpu.memory_space<vmem>>, vector<256x128xf32>
    %c0_3 = arith.constant 0 : index
    %c0_4 = arith.constant 0 : index
    %c0_5 = arith.constant 0 : index
    %2 = vector.load %arg2[%c0_3, %c0_4, %c0_5] : memref<3x128x128xf32, #tpu.memory_space<vmem>>, vector<1x128x128xf32>
    %3 = vector.shape_cast %2 : vector<1x128x128xf32> to vector<128x128xf32>
    %cst = arith.constant dense<0.000000e+00> : vector<256x128xf32>
    %4 = tpu.matmul %1, %3, %cst {dimension_numbers = #tpu.dot_dimension_numbers<[1], [0], [0], [1], [0, 0, 1, 1], [], []>} : vector<256x128xf32>, vector<128x128xf32>, vector<256x128xf32> -> vector<256x128xf32>
    %5 = vector.extract_strided_slice %0 {offsets = [0, 0], sizes = [1, 128], strides = [1, 1]} : vector<3x128xf32> to vector<1x128xf32>
    %6 = vector.shape_cast %5 : vector<1x128xf32> to vector<128xf32>
    %7 = vector.shape_cast %6 : vector<128xf32> to vector<1x128xf32>
    %8 = vector.broadcast %7 : vector<1x128xf32> to vector<256x128xf32>
    %9 = arith.addf %4, %8 : vector<256x128xf32>
    %cst_6 = arith.constant 0.000000e+00 : f32
    %10 = vector.broadcast %cst_6 : f32 to vector<256x128xf32>
    %11 = arith.maximumf %9, %10 : vector<256x128xf32>
    %c1 = arith.constant 1 : index
    %c0_7 = arith.constant 0 : index
    %c0_8 = arith.constant 0 : index
    %12 = vector.load %arg2[%c1, %c0_7, %c0_8] : memref<3x128x128xf32, #tpu.memory_space<vmem>>, vector<1x128x128xf32>
    %13 = vector.shape_cast %12 : vector<1x128x128xf32> to vector<128x128xf32>
    %cst_9 = arith.constant dense<0.000000e+00> : vector<256x128xf32>
    %14 = tpu.matmul %11, %13, %cst_9 {dimension_numbers = #tpu.dot_dimension_numbers<[1], [0], [0], [1], [0, 0, 1, 1], [], []>} : vector<256x128xf32>, vector<128x128xf32>, vector<256x128xf32> -> vector<256x128xf32>
    %15 = vector.extract_strided_slice %0 {offsets = [1, 0], sizes = [1, 128], strides = [1, 1]} : vector<3x128xf32> to vector<1x128xf32>
    %16 = vector.shape_cast %15 : vector<1x128xf32> to vector<128xf32>
    %17 = vector.shape_cast %16 : vector<128xf32> to vector<1x128xf32>
    %18 = vector.broadcast %17 : vector<1x128xf32> to vector<256x128xf32>
    %19 = arith.addf %14, %18 : vector<256x128xf32>
    %cst_10 = arith.constant 0.000000e+00 : f32
    %20 = vector.broadcast %cst_10 : f32 to vector<256x128xf32>
    %21 = arith.maximumf %19, %20 : vector<256x128xf32>
    %c2 = arith.constant 2 : index
    %c0_11 = arith.constant 0 : index
    %c0_12 = arith.constant 0 : index
    %22 = vector.load %arg2[%c2, %c0_11, %c0_12] : memref<3x128x128xf32, #tpu.memory_space<vmem>>, vector<1x128x128xf32>
    %23 = vector.shape_cast %22 : vector<1x128x128xf32> to vector<128x128xf32>
    %cst_13 = arith.constant dense<0.000000e+00> : vector<256x128xf32>
    %24 = tpu.matmul %21, %23, %cst_13 {dimension_numbers = #tpu.dot_dimension_numbers<[1], [0], [0], [1], [0, 0, 1, 1], [], []>} : vector<256x128xf32>, vector<128x128xf32>, vector<256x128xf32> -> vector<256x128xf32>
    %25 = vector.extract_strided_slice %0 {offsets = [2, 0], sizes = [1, 128], strides = [1, 1]} : vector<3x128xf32> to vector<1x128xf32>
    %26 = vector.shape_cast %25 : vector<1x128xf32> to vector<128xf32>
    %27 = vector.shape_cast %26 : vector<128xf32> to vector<1x128xf32>
    %28 = vector.broadcast %27 : vector<1x128xf32> to vector<256x128xf32>
    %29 = arith.addf %24, %28 : vector<256x128xf32>
    %c0_14 = arith.constant 0 : index
    %c0_15 = arith.constant 0 : index
    %30 = vector.load %arg4[%c0_14, %c0_15] : memref<256x128xf32, #tpu.memory_space<vmem>>, vector<256x128xf32>
    tpu.vector_store %arg4[%c0_14, %c0_15], %29 {strides = array<i32>} : memref<256x128xf32, #tpu.memory_space<vmem>>, vector<256x128xf32>,
    return
  }
  func.func @transform_0(%arg0: i32) -> (i32, i32) {
    %c0_i32 = arith.constant 0 : i32
    %c0_i32_0 = arith.constant 0 : i32
    return %arg0, %c0_i32 : i32, i32
  }
  func.func @transform_1(%arg0: i32) -> (i32, i32, i32) {
    %c0_i32 = arith.constant 0 : i32
    %c0_i32_0 = arith.constant 0 : i32
    %c0_i32_1 = arith.constant 0 : i32
    %c0_i32_2 = arith.constant 0 : i32
    return %c0_i32, %c0_i32_0, %c0_i32_1 : i32, i32, i32
  }
  func.func @transform_2(%arg0: i32) -> (i32, i32) {
    %c0_i32 = arith.constant 0 : i32
    %c0_i32_0 = arith.constant 0 : i32
    %c0_i32_1 = arith.constant 0 : i32
    return %c0_i32, %c0_i32_0 : i32, i32
  }
  func.func @transform_3(%arg0: i32) -> (i32, i32) {
    %c0_i32 = arith.constant 0 : i32
    %c0_i32_0 = arith.constant 0 : i32
    return %arg0, %c0_i32 : i32, i32
  }
}

</mosaic_0001>

<bundles_post_ra>
// kernel: tpu_custom_call.1
= control target key start
LH: loop header
LB: loop body
LE: loop exit
PB: predicated region body
PF: predicated region fallthrough
CT: control target
= control target key end

     0   :  { %8 = vsyncpa [#allocation3], 0  ;;  %s2323_s0 = inlined_call_operand.hbm [shape: f32[512,128], index: 0, kind: input, shape index: {}]   ;;  %s2324_s1 = inlined_call_operand.hbm [shape: f32[3,128,128], index: 1, kind: input, shape index: {}]   ;;  %s2325_s2 = inlined_call_operand.vmem [shape: f32[3,128], index: 2, kind: input, shape index: {}]   ;;  %s2326_s3 = inlined_call_operand.hbm [shape: f32[512,128], index: 3, kind: output, shape index: {}]  }
   0x1   :  { %10 = vsyncpa [#allocation3 + $0x1], 0 }
   0x2   :  { %11 = vsyncpa [#allocation6], 0 }
   0x3   :  { %12 = vsyncpa [#allocation4], 0 }
   0x4   :  { %14 = vsyncpa [#allocation4 + $0x1], 0  ;;  %s1901_s12 = smov 0   ;;  %s1903_s13 = smov 0  }
   0x5   :  { %s1905_s14 = smov 0   ;;  %s1907_s15 = smov 0  }
   0x6 LB: > { %s1922_s16 = sadd.s32 4294967295, %s1872_s15   ;;  %s1169_s17 = sadd.s32 4294967294, %s1872_s15   ;;  %s1872_s15 = sphi %s1907_s15, %s2346_s15   ;;  %s1868_s14 = sphi %s1905_s14, %s2345_s14   ;;  %s1864_s13 = sphi %s1903_s13, %s2344_s13   ;;  %s1860_s12 = sphi %s1901_s12, %s2343_s12  }
   0x7   : > { %p40_p0 = scmp.ne.s32.totalorder %s1864_s13, %s1860_s12  ;;  %p2327_p1 = scmp.eq.s32.totalorder %s1922_s16, 0 }
   0x8   : > { %p112_p3 = scmp.eq.s32.totalorder %s1169_s17, 1  ;;  %p1170_p5 = scmp.ge.s32.totalorder %s1872_s15, 1 }
   0x9   : > { %p1931_p4 = por %p2327_p1, %p40_p0  ;;  %p119_p7 = scmp.lt.s32.totalorder %s1872_s15, 3 }
   0xa   : > { %p1936_p6 = por %p112_p3, %p40_p0  ;;  %s1874_s21 = smov [#allocation5]  }
   0xb   : > { %s2330_s18 = scalar_select %p1931_p4, 1, 0 }
   0xc   : > { %s2331_s19 = scalar_select %p1936_p6, 1, 0 }
   0xd   : > { %p1941_p8 = pnand %p1170_p5, %p119_p7  ;;  %s131_s22 = sshll.u32 %s1874_s21, 4  ;;  %s1945_s22 = int_to_ptr.vmem [resolvable:$true] %s131_s22 }
   0xe   : > { %s1957_s24 = sadd.s32 1, %s1872_s15   ;;  %s27_s25 = sadd.s32 1, %s1868_s14 }
   0xf   : > { %s2332_s20 = scalar_select %p1941_p8, 1, 0 }
  0x10   : > { %p1691_p9 = pneg %p1941_p8  ;;  %s24_s26 = ssub.s32 %s1872_s15, %s1957_s24 }
  0x11   : > { %s1744_s29 = scalar_lea.hbm %s2324_s1, 6144 }
  0x12   : > { %p1952_p11 = pnand %p1691_p9, %p2327_p1  ;;  %p1745_p12 = scmp.ne.s32.totalorder %s2324_s1, %s1744_s29 }
  0x13   : > { %p1751_p5 = scmp.lt.u32.totalorder %s1744_s29, %s2324_s1 }
  0x14   : > { %p1746_p13 = pneg %p1952_p11 }
  0x16   : > { %p1747_p0 = pnand %p1746_p13, %p1745_p12 }
  0x18   : > { %p1748_p3 = pneg %p1747_p0 }
  0x1a   : > { %p1753_p7 = pnand %p1751_p5, %p1748_p3 }
  0x1c   : > { %1756 = shalt.err (!%p1753_p7)
}
  0x1d   : > { %s1757_s7 = scalar_lea.vmem %s1945_s22, 6144  ;;  %p1765_p2 = scmp.lt.s32.totalorder %s1945_s22, %s1945_s22 }
  0x1e   : > { %p1758_p9 = scmp.ne.s32.totalorder %s1945_s22, %s1757_s7  ;;  %p1766_p6 = scmp.lt.s32.totalorder %s1757_s7, %s1757_s7 }
  0x20   : > { %p1760_p10 = pnand %p1758_p9, %p1746_p13  ;;  %p1767_p4 = por %p1766_p6, %p1765_p2 }
  0x22   : > { %p1761_p1 = pneg %p1760_p10 }
  0x24   : > { %p1768_p8 = pnand %p1767_p4, %p1761_p1 }
  0x26   : > { %1771 = shalt.err (!%p1768_p8)
}
  0x27   : > { %s1875_s8 = smov 128   ;;  %s1876_s9 = smov 8  }
  0x28   : > { %1694 = dma.hbm_to_vmem [thread:$0]  (!%p1952_p11), %s2324_s1, 6144, %s1945_s22, [#allocation6], %s1875_s8, %s1875_s8, %s1876_s9  }
  0x29   : > { %p25_p1 = scmp.eq.s32.totalorder %s24_s26, 0  ;;  %p34_p2 = scmp.ne.s32.totalorder %s1868_s14, %s1864_s13 }
  0x2a   : > { %p35_p4 = scmp.eq.s32.totalorder %s1872_s15, 0  ;;  %p1704_p6 = scmp.lt.s32.totalorder %s1872_s15, 2 }
  0x2b   : > { %s1991_s17 = scalar_select %p25_p1, %s1868_s14, %s27_s25  }
  0x2c   : > { %p36_p8 = por %p35_p4, %p34_p2  ;;  %p2334_p10 = scmp.eq.s32.totalorder %s1922_s16, 1 }
  0x2d   : > { %s148_s23 = sand.u32 1, %s1868_s14   ;;  %s1185_s27 = sshll.u32 %s1872_s15, 12 }
  0x2e   : > { %p1995_p12 = por %p2334_p10, %p34_p2  ;;  %s1173_s28 = sshll.u32 %s148_s23, 8 }
  0x2f   : > { %s2004_s4 = scalar_lea.hbm %s2323_s0, %s1185_s27  ;;  %s152_s22 = scalar_lea.vmem [#allocation2], %s1173_s28 }
  0x30   : > { %s159_s25 = sshll.u32 %s152_s22, 4  ;;  %p2006_p11 = pnand %p1704_p6, %p36_p8  ;;  %s2010_s25 = int_to_ptr.vmem [resolvable:$true] %s159_s25 }
  0x31   : > { %s2012_s5 = scalar_lea.sflag [#allocation3], %s148_s23  ;;  %s1772_s6 = scalar_lea.hbm %s2004_s4, 4096 }
  0x32   : > { %p1773_p13 = scmp.ne.s32.totalorder %s2004_s4, %s1772_s6  ;;  %p1774_p0 = pneg %p2006_p11 }
  0x33   : > { %s1777_s11 = scalar_lea.hbm %s2323_s0, 8192  ;;  %p1778_p7 = scmp.lt.u32.totalorder %s2004_s4, %s2323_s0 }
  0x34   : > { %p1775_p3 = pnand %p1774_p0, %p1773_p13  ;;  %p1779_p9 = scmp.lt.u32.totalorder %s1777_s11, %s1772_s6 }
  0x35   : > { %p1781_p2 = scmp.lt.u32.totalorder %s1772_s6, %s2004_s4 }
  0x36   : > { %p1776_p5 = pneg %p1775_p3  ;;  %p1780_p1 = por %p1779_p9, %p1778_p7 }
  0x38   : > { %p1782_p4 = por %p1781_p2, %p1780_p1 }
  0x3a   : > { %p1783_p6 = pnand %p1782_p4, %p1776_p5 }
  0x3c   : > { %1786 = shalt.err (!%p1783_p6)
}
  0x3d   : > { %s1787_s23 = scalar_lea.vmem %s2010_s25, 4096  ;;  %s1877_s29 = smov [#allocation2]  }
  0x3e   : > { %p1788_p8 = scmp.ne.s32.totalorder %s2010_s25, %s1787_s23  ;;  %s1792_s30 = sshll.u32 %s1877_s29, 4  ;;  %s1793_s30 = int_to_ptr.vmem [resolvable:$false] %s1792_s30 }
  0x3f   : > { %s1794_s22 = scalar_lea.vmem %s1793_s30, 8192  ;;  %p1795_p3 = scmp.lt.s32.totalorder %s2010_s25, %s1793_s30 }
  0x40   : > { %p1790_p10 = pnand %p1788_p8, %p1774_p0  ;;  %p1796_p7 = scmp.lt.s32.totalorder %s1794_s22, %s1787_s23 }
  0x42   : > { %p1791_p13 = pneg %p1790_p10  ;;  %p1797_p9 = por %p1796_p7, %p1795_p3 }
  0x44   : > { %p1798_p1 = pnand %p1797_p9, %p1791_p13 }
  0x46   : > { %1801 = shalt.err (!%p1798_p1)
}
  0x47   : > { %1698 = dma.hbm_to_vmem [thread:$0]  (!%p2006_p11), %s2004_s4, 4096, %s2010_s25, %s2012_s5, %s1875_s8, %s1875_s8, %s1876_s9  }
  0x48   : > { %p2337_p0 = scmp.ne.s32.totalorder %s2332_s20, 0 }
  0x49   : > { %s2046_s6 = sand.u32 (!%p2337_p0), 1, %s1864_s13   ;;  %p2338_p5 = scmp.ne.s32.totalorder (!%p2337_p0), %s2330_s18, 0 }
  0x4a   : > { %171 = sbr.rel (%p2337_p0) target bundleno = 846 (0x34e), region = 32  ;;  %s1177_s7 = sshll.u32 (!%p2337_p0), %s2046_s6, 8 }
  0x4b   : > { %s174_s10 = scalar_lea.sflag (!%p2337_p0), [#allocation3], %s2046_s6  ;;  %s2052_s26 = scalar_lea.vmem (!%p2337_p0), [#allocation2], %s1177_s7 }
  0x51   : > { %1847 = dma.done.wait (%p2338_p5), %s174_s10, 4096  }
  0x52   : > { %1849 = vsyncadd (%p2338_p5), %s174_s10, 4294963200  ;;  %p2339_p11 = scmp.eq.s32.totalorder %s1922_s16, 0 }
  0x54   : > { %1851 = dma.done.wait (%p2339_p11), [#allocation6], 6144   ;;  %p2340_p2 = pmov %p2339_p11 }
  0x55   : > { %v239_v0 = vld [vmem:[#allocation5] sm:$0xff]  ;;  %v240_v1 = vld [vmem:[#allocation5 + $0x8] sm:$0xff]  ;;  %v241_v2 = vld [vmem:[#allocation5 + $0x10] sm:$0xff]  ;;  %s2208_s8 = scalar_lea.vmem [#allocation7], %s1177_s7  ;;  %s1186_s9 = sshll.u32 %s1922_s16, 12 }
  0x56   : > { %1853 = vsyncadd (%p2340_p2), [#allocation6], 4294961152  ;;  %v1571_v3 = vpack.c.bf16 %v240_v1, %v239_v0  ;;  %v242_v4 = vld [vmem:[#allocation5 + $0x18] sm:$0xff]  ;;  %v243_v6 = vld [vmem:[#allocation5 + $0x20] sm:$0xff]  ;;  %s1086_s4 = sshll.u32 %s2208_s8, 4  ;;  %s2274_s11 = scalar_lea.hbm %s2326_s3, %s1186_s9  ;;  %s2276_s4 = int_to_ptr.vmem [resolvable:$true] %s1086_s4 }
  0x57   : > { %v1575_v5 = vpack.c.bf16 %v242_v4, %v241_v2  ;;  %v244_v7 = vld [vmem:[#allocation5 + $0x28] sm:$0xff]  ;;  %v207_v9 = vld [vmem:[%s2052_s26] sm:$0xff]  ;;  %v245_v10 = vld [vmem:[#allocation5 + $0x30] sm:$0xff]  ;;  %s1073_s16 = scalar_lea.sflag [#allocation4], %s2046_s6  ;;  %s1802_s27 = scalar_lea.vmem %s2276_s4, 4096 }
  0x58   : > { %1572 = vmatprep.subr.bf16.mxu0 %v1571_v3  ;;  %1667 = vmatprep.subr.bf16.mxu1 %v1571_v3  ;;  %v1579_v8 = vpack.c.bf16 %v244_v7, %v243_v6  ;;  %v246_v11 = vld [vmem:[#allocation5 + $0x38] sm:$0xff]  ;;  %v247_v13 = vld [vmem:[#allocation5 + $0x40] sm:$0xff]  ;;  %v248_v14 = vld [vmem:[#allocation5 + $0x48] sm:$0xff]  ;;  %p1803_p4 = scmp.ne.s32.totalorder %s2276_s4, %s1802_s27  ;;  %s1878_s28 = smov [#allocation7]  }
  0x59   : > { %1574 = vmatpush3.bf16.msra.mxu0 %v1571_v3  ;;  %1675 = vmatpush3.bf16.msra.mxu1 %v1571_v3  ;;  %v1583_v12 = vpack.c.bf16 %v246_v11, %v245_v10  ;;  %v223_v15 = vld [vmem:[%s2052_s26 + $0x80] sm:$0xff]  ;;  %v1587_v16 = vpack.c.bf16 %v248_v14, %v247_v13  ;;  %v249_v17 = vld [vmem:[#allocation5 + $0x50] sm:$0xff]  ;;  %v250_v18 = vld [vmem:[#allocation5 + $0x58] sm:$0xff]  ;;  %s1806_s23 = sshll.u32 %s1878_s28, 4  ;;  %s1807_s23 = int_to_ptr.vmem [resolvable:$false] %s1806_s23 }
  0x5a   : > { %1576 = vmatprep.subr.bf16.mxu0 %v1575_v5  ;;  %1668 = vmatprep.subr.bf16.mxu1 %v1575_v5  ;;  %v1591_v19 = vpack.c.bf16 %v250_v18, %v249_v17  ;;  %v251_v20 = vld [vmem:[#allocation5 + $0x60] sm:$0xff]  ;;  %v252_v21 = vld [vmem:[#allocation5 + $0x68] sm:$0xff]  ;;  %v253_v23 = vld [vmem:[#allocation5 + $0x70] sm:$0xff]  ;;  %p1804_p6 = pnand %p1803_p4, %p1995_p12  ;;  %s1808_s29 = scalar_lea.vmem %s1807_s23, 8192 }
  0x5b   : > { %1363 = vmatprep.mubr.f32.mxu0 %v207_v9  ;;  %1387 = vmatprep.mubr.f32.mxu1 %v223_v15  ;;  %v1595_v22 = vpack.c.bf16 %v252_v21, %v251_v20  ;;  %v254_v24 = vld [vmem:[#allocation5 + $0x78] sm:$0xff]  ;;  %v517_v26 = vld [vmem:[#allocation5 + $0x80] sm:$0xff]  ;;  %v518_v27 = vld [vmem:[#allocation5 + $0x88] sm:$0xff]  ;;  %p1809_p10 = scmp.lt.s32.totalorder %s2276_s4, %s1807_s23  ;;  %p1810_p13 = scmp.lt.s32.totalorder %s1808_s29, %s1802_s27 }
  0x5c   : > { %v1599_v25 = vpack.c.bf16 %v254_v24, %v253_v23  ;;  %v1603_v28 = vpack.c.bf16 %v518_v27, %v517_v26  ;;  %v519_v29 = vld [vmem:[#allocation5 + $0x90] sm:$0xff]  ;;  %v520_v30 = vld [vmem:[#allocation5 + $0x98] sm:$0xff]  ;;  %v208_v31 = vld [vmem:[%s2052_s26 + $0x8] sm:$0xff]  ;;  %p1805_p8 = pneg %p1804_p6 }
  0x5d   : > { %1578 = vmatpush3.bf16.msra.mxu0 %v1575_v5  ;;  %1676 = vmatpush3.bf16.msra.mxu1 %v1575_v5  ;;  %v224_v32 = vld [vmem:[%s2052_s26 + $0x88] sm:$0xff]  ;;  %v209_v33 = vld [vmem:[%s2052_s26 + $0x10] sm:$0xff]  ;;  %v1607_v35 = vpack.c.bf16 %v520_v30, %v519_v29  ;;  %v521_v36 = vld [vmem:[#allocation5 + $0xa0] sm:$0xff]  ;;  %p1811_p3 = por %p1810_p13, %p1809_p10 }
  0x5e   : > { %1580 = vmatprep.subr.bf16.mxu0 %v1579_v8  ;;  %1669 = vmatprep.subr.bf16.mxu1 %v1579_v8  ;;  %v225_v34 = vld [vmem:[%s2052_s26 + $0x90] sm:$0xff]  ;;  %v522_v37 = vld [vmem:[#allocation5 + $0xa8] sm:$0xff]  ;;  %v210_v38 = vld [vmem:[%s2052_s26 + $0x18] sm:$0xff] }
  0x5f   : > { %v226_v39 = vld [vmem:[%s2052_s26 + $0x98] sm:$0xff]  ;;  %v211_v40 = vld [vmem:[%s2052_s26 + $0x20] sm:$0xff]  ;;  %v1611_v42 = vpack.c.bf16 %v522_v37, %v521_v36  ;;  %v523_v43 = vld [vmem:[#allocation5 + $0xb0] sm:$0xff]  ;;  %v255_v37 = vlaneseq  ;;  %p1812_p7 = pnand %p1811_p3, %p1805_p8 }
  0x60   : > { %v227_v41 = vld [vmem:[%s2052_s26 + $0xa0] sm:$0xff]  ;;  %v524_v44 = vld [vmem:[#allocation5 + $0xb8] sm:$0xff]  ;;  %v212_v45 = vld [vmem:[%s2052_s26 + $0x28] sm:$0xff] }
  0x61   : > { %1582 = vmatpush3.bf16.msra.mxu0 %v1579_v8  ;;  %1677 = vmatpush3.bf16.msra.mxu1 %v1579_v8  ;;  %v228_v46 = vld [vmem:[%s2052_s26 + $0xa8] sm:$0xff]  ;;  %v213_v47 = vld [vmem:[%s2052_s26 + $0x30] sm:$0xff]  ;;  %v1615_v49 = vpack.c.bf16 %v524_v44, %v523_v43  ;;  %v525_v50 = vld [vmem:[#allocation5 + $0xc0] sm:$0xff] }
  0x62   : > { %1584 = vmatprep.subr.bf16.mxu0 %v1583_v12  ;;  %1670 = vmatprep.subr.bf16.mxu1 %v1583_v12  ;;  %v229_v48 = vld [vmem:[%s2052_s26 + $0xb0] sm:$0xff]  ;;  %v526_v51 = vld [vmem:[#allocation5 + $0xc8] sm:$0xff]  ;;  %v214_v52 = vld [vmem:[%s2052_s26 + $0x38] sm:$0xff] }
  0x63   : > { %v230_v53 = vld [vmem:[%s2052_s26 + $0xb8] sm:$0xff]  ;;  %v215_v54 = vld [vmem:[%s2052_s26 + $0x40] sm:$0xff]  ;;  %v1619_v56 = vpack.c.bf16 %v526_v51, %v525_v50  ;;  %v527_v57 = vld [vmem:[#allocation5 + $0xd0] sm:$0xff] }
  0x64   : > { %v231_v55 = vld [vmem:[%s2052_s26 + $0xc0] sm:$0xff]  ;;  %v528_v58 = vld [vmem:[#allocation5 + $0xd8] sm:$0xff]  ;;  %v216_v59 = vld [vmem:[%s2052_s26 + $0x48] sm:$0xff] }
  0x65   : > { %1586 = vmatpush3.bf16.msra.mxu0 %v1583_v12  ;;  %1678 = vmatpush3.bf16.msra.mxu1 %v1583_v12  ;;  %v232_v60 = vld [vmem:[%s2052_s26 + $0xc8] sm:$0xff]  ;;  %v217_v61 = vld [vmem:[%s2052_s26 + $0x50] sm:$0xff]  ;;  %v1623_v63 = vpack.c.bf16 %v528_v58, %v527_v57  ;;  %v529_v0 = vld [vmem:[#allocation5 + $0xe0] sm:$0xff] }
  0x66   : > { %1588 = vmatprep.subr.bf16.mxu0 %v1587_v16  ;;  %1671 = vmatprep.subr.bf16.mxu1 %v1587_v16  ;;  %v233_v62 = vld [vmem:[%s2052_s26 + $0xd0] sm:$0xff]  ;;  %v530_v1 = vld [vmem:[#allocation5 + $0xe8] sm:$0xff]  ;;  %v218_v2 = vld [vmem:[%s2052_s26 + $0x58] sm:$0xff] }
  0x67   : > { %v234_v3 = vld [vmem:[%s2052_s26 + $0xd8] sm:$0xff]  ;;  %v219_v4 = vld [vmem:[%s2052_s26 + $0x60] sm:$0xff]  ;;  %v1627_v6 = vpack.c.bf16 %v530_v1, %v529_v0  ;;  %v220_v7 = vld [vmem:[%s2052_s26 + $0x68] sm:$0xff] }
  0x68   : > { %v235_v5 = vld [vmem:[%s2052_s26 + $0xe0] sm:$0xff]  ;;  %v236_v8 = vld [vmem:[%s2052_s26 + $0xe8] sm:$0xff]  ;;  %v221_v9 = vld [vmem:[%s2052_s26 + $0x70] sm:$0xff] }
  0x69   : > { %1590 = vmatpush3.bf16.msra.mxu0 %v1587_v16  ;;  %1679 = vmatpush3.bf16.msra.mxu1 %v1587_v16  ;;  %v237_v10 = vld [vmem:[%s2052_s26 + $0xf0] sm:$0xff]  ;;  %v222_v11 = vld [vmem:[%s2052_s26 + $0x78] sm:$0xff]  ;;  %v795_v16 = vld [vmem:[#allocation5 + $0x100] sm:$0xff] }
  0x6a   : > { %1592 = vmatprep.subr.bf16.mxu0 %v1591_v19  ;;  %1672 = vmatprep.subr.bf16.mxu1 %v1591_v19  ;;  %v238_v12 = vld [vmem:[%s2052_s26 + $0xf8] sm:$0xff]  ;;  %v531_v13 = vld [vmem:[#allocation5 + $0xf0] sm:$0xff]  ;;  %v796_v17 = vld [vmem:[#allocation5 + $0x108] sm:$0xff] }
  0x6b   : > { %v532_v14 = vld [vmem:[#allocation5 + $0xf8] sm:$0xff]  ;;  %v797_v18 = vld [vmem:[#allocation5 + $0x110] sm:$0xff]  ;;  %v800_v23 = vld [vmem:[#allocation5 + $0x128] sm:$0xff] }
  0x6c   : > { %v1631_v15 = vpack.c.bf16 %v532_v14, %v531_v13  ;;  %v798_v20 = vld [vmem:[#allocation5 + $0x118] sm:$0xff]  ;;  %v804_v29 = vld [vmem:[#allocation5 + $0x148] sm:$0xff] }
  0x6d   : > { %1594 = vmatpush3.bf16.msra.mxu0 %v1591_v19  ;;  %1680 = vmatpush3.bf16.msra.mxu1 %v1591_v19  ;;  %v1635_v19 = vpack.c.bf16 %v796_v17, %v795_v16  ;;  %v1639_v21 = vpack.c.bf16 %v798_v20, %v797_v18  ;;  %v802_v26 = vld [vmem:[#allocation5 + $0x138] sm:$0xff] }
  0x6e   : > { %1596 = vmatprep.subr.bf16.mxu0 %v1595_v22  ;;  %1673 = vmatprep.subr.bf16.mxu1 %v1595_v22 }
  0x71   : > { %1598 = vmatpush3.bf16.msra.mxu0 %v1595_v22  ;;  %1681 = vmatpush3.bf16.msra.mxu1 %v1595_v22  ;;  %v799_v22 = vld [vmem:[#allocation5 + $0x120] sm:$0xff] }
  0x72   : > { %1600 = vmatprep.subr.bf16.mxu0 %v1599_v25  ;;  %1674 = vmatprep.subr.bf16.mxu1 %v1599_v25  ;;  %v1643_v24 = vpack.c.bf16 %v800_v23, %v799_v22 }
  0x75   : > { %1602 = vmatpush3.bf16.msra.mxu0 %v1599_v25  ;;  %1682 = vmatpush3.bf16.msra.mxu1 %v1599_v25  ;;  %v801_v25 = vld [vmem:[#allocation5 + $0x130] sm:$0xff] }
  0x76   : > { %1604 = vmatprep.subr.bf16.mxu1 %v1603_v28  ;;  %1636 = vmatprep.subr.bf16.mxu0 %v1635_v19  ;;  %v1647_v27 = vpack.c.bf16 %v802_v26, %v801_v25 }
  0x78   : > { %1364 = vmatmul.mubr.f32.vlgmr.msra.gmra.mrb[0].mxu0 %v208_v31  ;;  %1388 = vmatmul.mubr.f32.vlgmr.msra.gmra.mrb[0].mxu1 %v224_v32  ;;  %v805_v31 = vld [vmem:[#allocation5 + $0x150] sm:$0xff]  ;;  %v806_v32 = vld [vmem:[#allocation5 + $0x158] sm:$0xff] }
  0x79   : > { %1366 = vmatprep.mubr.f32.mxu0 %v209_v33  ;;  %1390 = vmatprep.mubr.f32.mxu1 %v225_v34  ;;  %v1655_v33 = vpack.c.bf16 %v806_v32, %v805_v31  ;;  %v807_v34 = vld [vmem:[#allocation5 + $0x160] sm:$0xff] }
  0x7a   : > { %1606 = vmatpush3.bf16.msra.mxu1 %v1603_v28  ;;  %1638 = vmatpush3.bf16.msra.mxu0 %v1635_v19  ;;  %v803_v28 = vld [vmem:[#allocation5 + $0x140] sm:$0xff] }
  0x7b   : > { %1608 = vmatprep.subr.bf16.mxu1 %v1607_v35  ;;  %1640 = vmatprep.subr.bf16.mxu0 %v1639_v21  ;;  %v1651_v30 = vpack.c.bf16 %v804_v29, %v803_v28 }
  0x7c   : > { %1367 = vmatmul.mubr.f32.gmra.mrb[2].mxu0 %v210_v38  ;;  %1391 = vmatmul.mubr.f32.gmra.mrb[2].mxu1 %v226_v39  ;;  %v2094_v38 = vshrl.u32 %v255_v37, 7 }
  0x7d   : > { %1369 = vmatprep.mubr.f32.mxu0 %v211_v40  ;;  %1393 = vmatprep.mubr.f32.mxu1 %v227_v41  ;;  %v2100_v40 = vld [vmem:[%s2325_s2] sm:$0x7] }
  0x7e   : > { %1610 = vmatpush3.bf16.msra.mxu1 %v1607_v35  ;;  %1642 = vmatpush3.bf16.msra.mxu0 %v1639_v21  ;;  %v808_v35 = vld [vmem:[#allocation5 + $0x168] sm:$0xff]  ;;  %v257_v39 = vsub.s32 0, %v2094_v38 }
  0x7f   : > { %1612 = vmatprep.subr.bf16.mxu1 %v1611_v42  ;;  %1644 = vmatprep.subr.bf16.mxu0 %v1643_v24  ;;  %v1659_v36 = vpack.c.bf16 %v808_v35, %v807_v34 }
  0x80   : > { %1370 = vmatmul.mubr.f32.gmra.mrb[4].mxu0 %v212_v45  ;;  %1394 = vmatmul.mubr.f32.gmra.mrb[4].mxu1 %v228_v46  ;;  %v2103_v41 = vrot.slane %v2100_v40, %v257_v39 }
  0x81   : > { %1372 = vmatprep.mubr.f32.mxu0 %v213_v47  ;;  %1396 = vmatprep.mubr.f32.mxu1 %v229_v48 }
  0x82   : > { %1614 = vmatpush3.bf16.msra.mxu1 %v1611_v42  ;;  %1646 = vmatpush3.bf16.msra.mxu0 %v1643_v24 }
  0x83   : > { %1616 = vmatprep.subr.bf16.mxu1 %v1615_v49  ;;  %1648 = vmatprep.subr.bf16.mxu0 %v1647_v27 }
  0x84   : > { %1373 = vmatmul.mubr.f32.gmra.mrb[6].mxu0 %v214_v52  ;;  %1397 = vmatmul.mubr.f32.gmra.mrb[6].mxu1 %v230_v53 }
  0x85   : > { %1375 = vmatprep.mubr.f32.mxu0 %v215_v54  ;;  %1399 = vmatprep.mubr.f32.mxu1 %v231_v55 }
  0x86   : > { %1618 = vmatpush3.bf16.msra.mxu1 %v1615_v49  ;;  %1650 = vmatpush3.bf16.msra.mxu0 %v1647_v27 }
  0x87   : > { %1620 = vmatprep.subr.bf16.mxu1 %v1619_v56  ;;  %1652 = vmatprep.subr.bf16.mxu0 %v1651_v30 }
  0x88   : > { %1376 = vmatmul.mubr.f32.gmra.mrb[8].mxu0 %v216_v59  ;;  %1400 = vmatmul.mubr.f32.gmra.mrb[8].mxu1 %v232_v60 }
  0x89   : > { %1378 = vmatprep.mubr.f32.mxu0 %v217_v61  ;;  %1402 = vmatprep.mubr.f32.mxu1 %v233_v62 }
  0x8a   : > { %1622 = vmatpush3.bf16.msra.mxu1 %v1619_v56  ;;  %1654 = vmatpush3.bf16.msra.mxu0 %v1651_v30 }
  0x8b   : > { %1624 = vmatprep.subr.bf16.mxu1 %v1623_v63  ;;  %1656 = vmatprep.subr.bf16.mxu0 %v1655_v33 }
  0x8c   : > { %1379 = vmatmul.mubr.f32.gmra.mrb[10].mxu0 %v218_v2  ;;  %1403 = vmatmul.mubr.f32.gmra.mrb[10].mxu1 %v234_v3 }
  0x8d   : > { %1381 = vmatprep.mubr.f32.mxu0 %v219_v4  ;;  %1405 = vmatprep.mubr.f32.mxu1 %v235_v5 }
  0x8e   : > { %1626 = vmatpush3.bf16.msra.mxu1 %v1623_v63  ;;  %1658 = vmatpush3.bf16.msra.mxu0 %v1655_v33 }
  0x8f   : > { %1628 = vmatprep.subr.bf16.mxu1 %v1627_v6  ;;  %1660 = vmatprep.subr.bf16.mxu0 %v1659_v36 }
  0x90   : > { %1382 = vmatmul.mubr.f32.gmra.mrb[12].mxu0 %v220_v7  ;;  %1406 = vmatmul.mubr.f32.gmra.mrb[12].mxu1 %v236_v8 }
  0x91   : > { %1384 = vmatprep.mubr.f32.mxu0 %v221_v9  ;;  %1408 = vmatprep.mubr.f32.mxu1 %v237_v10 }
  0x92   : > { %1630 = vmatpush3.bf16.msra.mxu1 %v1627_v6  ;;  %1662 = vmatpush3.bf16.msra.mxu0 %v1659_v36 }
  0x93   : > { %1632 = vmatprep.subr.bf16.mxu1 %v1631_v15 }
  0x94   : > { %1385 = vmatmul.mubr.f32.gmra.mrb[14].mxu0 %v222_v11  ;;  %1409 = vmatmul.mubr.f32.gmra.mrb[14].mxu1 %v238_v12 }
  0x96   : > { %1634 = vmatpush3.bf16.msra.mxu1 %v1631_v15 }
 0x14b   : > { %v1365_v42 = vpop.f32.mrb[0].mxu0  ;;  %v2105_v43 = vpop.f32.mrb[0].mxu1 }
 0x14c   : > { %v331_v44 = vadd.f32 %v1365_v42, %v2103_v41  ;;  %v325_v45 = vpop.f32.mrb[1].mxu0  ;;  %v2108_v46 = vpop.f32.mrb[1].mxu1 }
 0x14d   : > { %v326_v47 = vadd.f32 %v325_v45, %v2103_v41  ;;  %v406_v34 = vadd.f32 %v2108_v46, %v2103_v41 }
 0x14e   : > { %v485_v51 = vmax.f32 %v331_v44, 0.0 }
 0x14f   : > { %v484_v48 = vmax.f32 %v326_v47, 0.0  ;;  %v1368_v49 = vpop.f32.mrb[2].mxu0  ;;  %v2111_v50 = vpop.f32.mrb[2].mxu1  ;;  %v500_v47 = vmax.f32 %v406_v34, 0.0 }
 0x150   : > { %v341_v52 = vadd.f32 %v1368_v49, %v2103_v41  ;;  %v335_v53 = vpop.f32.mrb[3].mxu0  ;;  %v2114_v54 = vpop.f32.mrb[3].mxu1 }
 0x151   : > { %v336_v55 = vadd.f32 %v335_v53, %v2103_v41  ;;  %1443 = vmatprep.mubr.f32.mxu1 %v484_v48  ;;  %v416_v48 = vadd.f32 %v2114_v54, %v2103_v41 }
 0x152   : > { %1444 = vmatmul.mubr.f32.vlgmr.msra.gmra.mrb[16].mxu1 %v485_v51  ;;  %v487_v59 = vmax.f32 %v341_v52, 0.0  ;;  %v411_v51 = vadd.f32 %v2105_v43, %v2103_v41 }
 0x153   : > { %v486_v56 = vmax.f32 %v336_v55, 0.0  ;;  %v1371_v57 = vpop.f32.mrb[4].mxu0  ;;  %v2117_v58 = vpop.f32.mrb[4].mxu1  ;;  %v502_v46 = vmax.f32 %v416_v48, 0.0  ;;  %v421_v55 = vadd.f32 %v2111_v50, %v2103_v41 }
 0x154   : > { %v351_v60 = vadd.f32 %v1371_v57, %v2103_v41  ;;  %v345_v61 = vpop.f32.mrb[5].mxu0  ;;  %v2120_v62 = vpop.f32.mrb[5].mxu1  ;;  %v501_v53 = vmax.f32 %v411_v51, 0.0  ;;  %v431_v43 = vadd.f32 %v2117_v58, %v2103_v41 }
 0x155   : > { %v346_v63 = vadd.f32 %v345_v61, %v2103_v41  ;;  %1446 = vmatprep.mubr.f32.mxu1 %v486_v56  ;;  %v426_v52 = vadd.f32 %v2120_v62, %v2103_v41  ;;  %v503_v57 = vmax.f32 %v421_v55, 0.0 }
 0x156   : > { %1447 = vmatmul.mubr.f32.gmra.mrb[18].mxu1 %v487_v59  ;;  %v489_v3 = vmax.f32 %v351_v60, 0.0  ;;  %v505_v61 = vmax.f32 %v431_v43, 0.0 }
 0x157   : > { %v488_v0 = vmax.f32 %v346_v63, 0.0  ;;  %v1374_v1 = vpop.f32.mrb[6].mxu0  ;;  %v2123_v2 = vpop.f32.mrb[6].mxu1  ;;  %v504_v56 = vmax.f32 %v426_v52, 0.0 }
 0x158   : > { %v361_v4 = vadd.f32 %v1374_v1, %v2103_v41  ;;  %v355_v5 = vpop.f32.mrb[7].mxu0  ;;  %v435_v6 = vpop.f32.mrb[7].mxu1  ;;  %v441_v62 = vadd.f32 %v2123_v2, %v2103_v41 }
 0x159   : > { %v356_v7 = vadd.f32 %v355_v5, %v2103_v41  ;;  %1449 = vmatprep.mubr.f32.mxu1 %v488_v0  ;;  %v436_v54 = vadd.f32 %v435_v6, %v2103_v41 }
 0x15a   : > { %1450 = vmatmul.mubr.f32.gmra.mrb[20].mxu1 %v489_v3  ;;  %v491_v11 = vmax.f32 %v361_v4, 0.0  ;;  %v507_v0 = vmax.f32 %v441_v62, 0.0 }
 0x15b   : > { %v490_v8 = vmax.f32 %v356_v7, 0.0  ;;  %v1377_v9 = vpop.f32.mrb[8].mxu0  ;;  %v2127_v10 = vpop.f32.mrb[8].mxu1  ;;  %v506_v59 = vmax.f32 %v436_v54, 0.0 }
 0x15c   : > { %v371_v12 = vadd.f32 %v1377_v9, %v2103_v41  ;;  %v365_v13 = vpop.f32.mrb[9].mxu0  ;;  %v445_v14 = vpop.f32.mrb[9].mxu1  ;;  %v451_v1 = vadd.f32 %v2127_v10, %v2103_v41 }
 0x15d   : > { %v366_v15 = vadd.f32 %v365_v13, %v2103_v41  ;;  %1452 = vmatprep.mubr.f32.mxu1 %v490_v8  ;;  %v446_v60 = vadd.f32 %v445_v14, %v2103_v41  ;;  %v809_v13 = vld [vmem:[#allocation5 + $0x170] sm:$0xff]  ;;  %v810_v14 = vld [vmem:[#allocation5 + $0x178] sm:$0xff] }
 0x15e   : > { %1453 = vmatmul.mubr.f32.gmra.mrb[22].mxu1 %v491_v11  ;;  %v493_v19 = vmax.f32 %v371_v12, 0.0  ;;  %v509_v4 = vmax.f32 %v451_v1, 0.0 }
 0x15f   : > { %v492_v16 = vmax.f32 %v366_v15, 0.0  ;;  %v1380_v17 = vpop.f32.mrb[10].mxu0  ;;  %v2131_v18 = vpop.f32.mrb[10].mxu1  ;;  %v508_v50 = vmax.f32 %v446_v60, 0.0  ;;  %v1663_v15 = vpack.c.bf16 %v810_v14, %v809_v13 }
 0x160   : > { %v381_v20 = vadd.f32 %v1380_v17, %v2103_v41  ;;  %v375_v21 = vpop.f32.mrb[11].mxu0  ;;  %v455_v22 = vpop.f32.mrb[11].mxu1  ;;  %v461_v5 = vadd.f32 %v2131_v18, %v2103_v41 }
 0x161   : > { %v376_v23 = vadd.f32 %v375_v21, %v2103_v41  ;;  %1455 = vmatprep.mubr.f32.mxu1 %v492_v16  ;;  %v456_v63 = vadd.f32 %v455_v22, %v2103_v41  ;;  %1664 = vmatprep.subr.bf16.mxu0 %v1663_v15  ;;  %v535_v16 = vsub.s32 1, %v2094_v38 }
 0x162   : > { %1456 = vmatmul.mubr.f32.gmra.mrb[24].mxu1 %v493_v19  ;;  %v495_v27 = vmax.f32 %v381_v20, 0.0  ;;  %v511_v7 = vmax.f32 %v461_v5, 0.0  ;;  %1666 = vmatpush3.bf16.msra.mxu0 %v1663_v15 }
 0x163   : > { %v494_v24 = vmax.f32 %v376_v23, 0.0  ;;  %v1383_v25 = vpop.f32.mrb[12].mxu0  ;;  %v1407_v26 = vpop.f32.mrb[12].mxu1  ;;  %v510_v58 = vmax.f32 %v456_v63, 0.0  ;;  %v2166_v17 = vrot.slane %v2100_v40, %v535_v16 }
 0x164   : > { %v391_v28 = vadd.f32 %v1383_v25, %v2103_v41  ;;  %v385_v29 = vpop.f32.mrb[13].mxu0  ;;  %v465_v30 = vpop.f32.mrb[13].mxu1  ;;  %v471_v8 = vadd.f32 %v1407_v26, %v2103_v41 }
 0x165   : > { %v386_v31 = vadd.f32 %v385_v29, %v2103_v41  ;;  %1458 = vmatprep.mubr.f32.mxu1 %v494_v24  ;;  %v466_v3 = vadd.f32 %v465_v30, %v2103_v41 }
 0x166   : > { %1459 = vmatmul.mubr.f32.gmra.mrb[26].mxu1 %v495_v27  ;;  %v497_v36 = vmax.f32 %v391_v28, 0.0  ;;  %v513_v10 = vmax.f32 %v471_v8, 0.0 }
 0x167   : > { %v496_v32 = vmax.f32 %v386_v31, 0.0  ;;  %v1386_v33 = vpop.f32.mrb[14].mxu0  ;;  %v1410_v35 = vpop.f32.mrb[14].mxu1  ;;  %v512_v2 = vmax.f32 %v466_v3, 0.0 }
 0x168   : > { %v401_v37 = vadd.f32 %v1386_v33, %v2103_v41  ;;  %v395_v39 = vpop.f32.mrb[15].mxu0  ;;  %v475_v42 = vpop.f32.mrb[15].mxu1  ;;  %v481_v11 = vadd.f32 %v1410_v35, %v2103_v41 }
 0x169   : > { %v396_v44 = vadd.f32 %v395_v39, %v2103_v41  ;;  %1461 = vmatprep.mubr.f32.mxu1 %v496_v32  ;;  %v476_v6 = vadd.f32 %v475_v42, %v2103_v41 }
 0x16a   : > { %1462 = vmatmul.mubr.f32.gmra.mrb[28].mxu1 %v497_v36  ;;  %v499_v49 = vmax.f32 %v401_v37, 0.0  ;;  %v515_v12 = vmax.f32 %v481_v11, 0.0 }
 0x16b   : > { %v498_v45 = vmax.f32 %v396_v44, 0.0  ;;  %v514_v9 = vmax.f32 %v476_v6, 0.0 }
 0x16d   : > { %1464 = vmatprep.mubr.f32.mxu1 %v498_v45 }
 0x16e   : > { %1465 = vmatmul.mubr.f32.gmra.mrb[30].mxu1 %v499_v49 }
 0x16f   : > { %1467 = vmatprep.mubr.f32.mxu1 %v500_v47 }
 0x172   : > { %1468 = vmatmul.mubr.f32.gmra.mrb[32].mxu1 %v501_v53 }
 0x173   : > { %1470 = vmatprep.mubr.f32.mxu1 %v502_v46 }
 0x176   : > { %1471 = vmatmul.mubr.f32.gmra.mrb[34].mxu1 %v503_v57 }
 0x177   : > { %1473 = vmatprep.mubr.f32.mxu1 %v504_v56 }
 0x17a   : > { %1474 = vmatmul.mubr.f32.gmra.mrb[36].mxu1 %v505_v61 }
 0x17b   : > { %1476 = vmatprep.mubr.f32.mxu1 %v506_v59 }
 0x17e   : > { %1477 = vmatmul.mubr.f32.gmra.mrb[38].mxu1 %v507_v0 }
 0x17f   : > { %1479 = vmatprep.mubr.f32.mxu1 %v508_v50 }
 0x182   : > { %1480 = vmatmul.mubr.f32.gmra.mrb[40].mxu1 %v509_v4 }
 0x183   : > { %1482 = vmatprep.mubr.f32.mxu1 %v510_v58 }
 0x186   : > { %1483 = vmatmul.mubr.f32.gmra.mrb[42].mxu1 %v511_v7 }
 0x187   : > { %1485 = vmatprep.mubr.f32.mxu1 %v512_v2 }
 0x18a   : > { %1486 = vmatmul.mubr.f32.gmra.mrb[44].mxu1 %v513_v10 }
 0x18b   : > { %1488 = vmatprep.mubr.f32.mxu1 %v514_v9 }
 0x18e   : > { %1489 = vmatmul.mubr.f32.gmra.mrb[46].mxu1 %v515_v12 }
 0x225   : > { %v1445_v18 = vpop.f32.mrb[16].mxu1 }
 0x226   : > { %v609_v19 = vadd.f32 %v1445_v18, %v2166_v17  ;;  %v603_v20 = vpop.f32.mrb[17].mxu1 }
 0x227   : > { %v604_v41 = vadd.f32 %v603_v20, %v2166_v17 }
 0x228   : > { %v763_v23 = vmax.f32 %v609_v19, 0.0 }
 0x229   : > { %v762_v21 = vmax.f32 %v604_v41, 0.0  ;;  %v1448_v22 = vpop.f32.mrb[18].mxu1 }
 0x22a   : > { %v619_v24 = vadd.f32 %v1448_v22, %v2166_v17  ;;  %v613_v25 = vpop.f32.mrb[19].mxu1 }
 0x22b   : > { %v614_v26 = vadd.f32 %v613_v25, %v2166_v17  ;;  %1523 = vmatprep.mubr.f32.mxu0 %v762_v21 }
 0x22c   : > { %1524 = vmatmul.mubr.f32.vlgmr.msra.gmra.mrb[16].mxu0 %v763_v23  ;;  %v765_v29 = vmax.f32 %v619_v24, 0.0 }
 0x22d   : > { %v764_v27 = vmax.f32 %v614_v26, 0.0  ;;  %v1451_v28 = vpop.f32.mrb[20].mxu1 }
 0x22e   : > { %v629_v30 = vadd.f32 %v1451_v28, %v2166_v17  ;;  %v623_v31 = vpop.f32.mrb[21].mxu1 }
 0x22f   : > { %v624_v32 = vadd.f32 %v623_v31, %v2166_v17  ;;  %1526 = vmatprep.mubr.f32.mxu0 %v764_v27 }
 0x230   : > { %1527 = vmatmul.mubr.f32.gmra.mrb[18].mxu0 %v765_v29  ;;  %v767_v35 = vmax.f32 %v629_v30, 0.0 }
 0x231   : > { %v766_v33 = vmax.f32 %v624_v32, 0.0  ;;  %v1454_v34 = vpop.f32.mrb[22].mxu1 }
 0x232   : > { %v639_v36 = vadd.f32 %v1454_v34, %v2166_v17  ;;  %v633_v37 = vpop.f32.mrb[23].mxu1 }
 0x233   : > { %v634_v39 = vadd.f32 %v633_v37, %v2166_v17  ;;  %1529 = vmatprep.mubr.f32.mxu0 %v766_v33 }
 0x234   : > { %1530 = vmatmul.mubr.f32.gmra.mrb[20].mxu0 %v767_v35  ;;  %v769_v45 = vmax.f32 %v639_v36, 0.0 }
 0x235   : > { %v768_v42 = vmax.f32 %v634_v39, 0.0  ;;  %v1457_v44 = vpop.f32.mrb[24].mxu1 }
 0x236   : > { %v649_v47 = vadd.f32 %v1457_v44, %v2166_v17  ;;  %v643_v48 = vpop.f32.mrb[25].mxu1 }
 0x237   : > { %v644_v49 = vadd.f32 %v643_v48, %v2166_v17  ;;  %1532 = vmatprep.mubr.f32.mxu0 %v768_v42 }
 0x238   : > { %1533 = vmatmul.mubr.f32.gmra.mrb[22].mxu0 %v769_v45  ;;  %v771_v52 = vmax.f32 %v649_v47, 0.0 }
 0x239   : > { %v770_v51 = vmax.f32 %v644_v49, 0.0  ;;  %v1460_v46 = vpop.f32.mrb[26].mxu1 }
 0x23a   : > { %v659_v53 = vadd.f32 %v1460_v46, %v2166_v17  ;;  %v653_v55 = vpop.f32.mrb[27].mxu1 }
 0x23b   : > { %v654_v56 = vadd.f32 %v653_v55, %v2166_v17  ;;  %1535 = vmatprep.mubr.f32.mxu0 %v770_v51 }
 0x23c   : > { %1536 = vmatmul.mubr.f32.gmra.mrb[24].mxu0 %v771_v52  ;;  %v773_v43 = vmax.f32 %v659_v53, 0.0 }
 0x23d   : > { %v772_v54 = vmax.f32 %v654_v56, 0.0  ;;  %v1463_v57 = vpop.f32.mrb[28].mxu1 }
 0x23e   : > { %v669_v59 = vadd.f32 %v1463_v57, %v2166_v17  ;;  %v663_v60 = vpop.f32.mrb[29].mxu1  ;;  %v813_v57 = vsub.s32 2, %v2094_v38 }
 0x23f   : > { %v664_v61 = vadd.f32 %v663_v60, %v2166_v17  ;;  %1538 = vmatprep.mubr.f32.mxu0 %v772_v54 }
 0x240   : > { %1539 = vmatmul.mubr.f32.gmra.mrb[26].mxu0 %v773_v43  ;;  %v775_v63 = vmax.f32 %v669_v59, 0.0  ;;  %v2202_v43 = vrot.slane %v2100_v40, %v813_v57 }
 0x241   : > { %v774_v62 = vmax.f32 %v664_v61, 0.0  ;;  %v1466_v50 = vpop.f32.mrb[30].mxu1 }
 0x242   : > { %v679_v0 = vadd.f32 %v1466_v50, %v2166_v17  ;;  %v673_v1 = vpop.f32.mrb[31].mxu1 }
 0x243   : > { %v674_v58 = vadd.f32 %v673_v1, %v2166_v17  ;;  %1541 = vmatprep.mubr.f32.mxu0 %v774_v62 }
 0x244   : > { %1542 = vmatmul.mubr.f32.gmra.mrb[28].mxu0 %v775_v63  ;;  %v777_v5 = vmax.f32 %v679_v0, 0.0 }
 0x245   : > { %v776_v3 = vmax.f32 %v674_v58, 0.0  ;;  %v1469_v4 = vpop.f32.mrb[32].mxu1 }
 0x246   : > { %v689_v2 = vadd.f32 %v1469_v4, %v2166_v17  ;;  %v683_v6 = vpop.f32.mrb[33].mxu1 }
 0x247   : > { %v684_v7 = vadd.f32 %v683_v6, %v2166_v17  ;;  %1544 = vmatprep.mubr.f32.mxu0 %v776_v3 }
 0x248   : > { %1545 = vmatmul.mubr.f32.gmra.mrb[30].mxu0 %v777_v5  ;;  %v779_v10 = vmax.f32 %v689_v2, 0.0 }
 0x249   : > { %v778_v8 = vmax.f32 %v684_v7, 0.0  ;;  %v1472_v9 = vpop.f32.mrb[34].mxu1 }
 0x24a   : > { %v699_v11 = vadd.f32 %v1472_v9, %v2166_v17  ;;  %v693_v12 = vpop.f32.mrb[35].mxu1 }
 0x24b   : > { %v694_v13 = vadd.f32 %v693_v12, %v2166_v17  ;;  %1547 = vmatprep.mubr.f32.mxu0 %v778_v8 }
 0x24c   : > { %1548 = vmatmul.mubr.f32.gmra.mrb[32].mxu0 %v779_v10  ;;  %v781_v16 = vmax.f32 %v699_v11, 0.0 }
 0x24d   : > { %v780_v14 = vmax.f32 %v694_v13, 0.0  ;;  %v1475_v15 = vpop.f32.mrb[36].mxu1 }
 0x24e   : > { %v709_v18 = vadd.f32 %v1475_v15, %v2166_v17  ;;  %v703_v19 = vpop.f32.mrb[37].mxu1 }
 0x24f   : > { %v704_v20 = vadd.f32 %v703_v19, %v2166_v17  ;;  %1550 = vmatprep.mubr.f32.mxu0 %v780_v14 }
 0x250   : > { %1551 = vmatmul.mubr.f32.gmra.mrb[34].mxu0 %v781_v16  ;;  %v783_v22 = vmax.f32 %v709_v18, 0.0 }
 0x251   : > { %v782_v41 = vmax.f32 %v704_v20, 0.0  ;;  %v1478_v21 = vpop.f32.mrb[38].mxu1 }
 0x252   : > { %v719_v23 = vadd.f32 %v1478_v21, %v2166_v17  ;;  %v713_v24 = vpop.f32.mrb[39].mxu1 }
 0x253   : > { %v714_v25 = vadd.f32 %v713_v24, %v2166_v17  ;;  %1553 = vmatprep.mubr.f32.mxu0 %v782_v41 }
 0x254   : > { %1554 = vmatmul.mubr.f32.gmra.mrb[36].mxu0 %v783_v22  ;;  %v785_v28 = vmax.f32 %v719_v23, 0.0 }
 0x255   : > { %v784_v26 = vmax.f32 %v714_v25, 0.0  ;;  %v1481_v27 = vpop.f32.mrb[40].mxu1 }
 0x256   : > { %v729_v29 = vadd.f32 %v1481_v27, %v2166_v17  ;;  %v723_v30 = vpop.f32.mrb[41].mxu1 }
 0x257   : > { %v724_v31 = vadd.f32 %v723_v30, %v2166_v17  ;;  %1556 = vmatprep.mubr.f32.mxu0 %v784_v26 }
 0x258   : > { %1557 = vmatmul.mubr.f32.gmra.mrb[38].mxu0 %v785_v28  ;;  %v787_v34 = vmax.f32 %v729_v29, 0.0 }
 0x259   : > { %v786_v32 = vmax.f32 %v724_v31, 0.0  ;;  %v1484_v33 = vpop.f32.mrb[42].mxu1 }
 0x25a   : > { %v739_v35 = vadd.f32 %v1484_v33, %v2166_v17  ;;  %v733_v36 = vpop.f32.mrb[43].mxu1 }
 0x25b   : > { %v734_v37 = vadd.f32 %v733_v36, %v2166_v17  ;;  %1559 = vmatprep.mubr.f32.mxu0 %v786_v32 }
 0x25c   : > { %1560 = vmatmul.mubr.f32.gmra.mrb[40].mxu0 %v787_v34  ;;  %v789_v44 = vmax.f32 %v739_v35, 0.0 }
 0x25d   : > { %v788_v39 = vmax.f32 %v734_v37, 0.0  ;;  %v1487_v42 = vpop.f32.mrb[44].mxu1 }
 0x25e   : > { %v749_v45 = vadd.f32 %v1487_v42, %v2166_v17  ;;  %v743_v47 = vpop.f32.mrb[45].mxu1 }
 0x25f   : > { %v744_v48 = vadd.f32 %v743_v47, %v2166_v17  ;;  %1562 = vmatprep.mubr.f32.mxu0 %v788_v39 }
 0x260   : > { %1563 = vmatmul.mubr.f32.gmra.mrb[42].mxu0 %v789_v44  ;;  %v791_v46 = vmax.f32 %v749_v45, 0.0 }
 0x261   : > { %v790_v49 = vmax.f32 %v744_v48, 0.0  ;;  %v1490_v51 = vpop.f32.mrb[46].mxu1 }
 0x262   : > { %v759_v52 = vadd.f32 %v1490_v51, %v2166_v17  ;;  %v753_v53 = vpop.f32.mrb[47].mxu1 }
 0x263   : > { %v754_v55 = vadd.f32 %v753_v53, %v2166_v17  ;;  %1565 = vmatprep.mubr.f32.mxu0 %v790_v49 }
 0x264   : > { %1566 = vmatmul.mubr.f32.gmra.mrb[44].mxu0 %v791_v46  ;;  %v793_v54 = vmax.f32 %v759_v52, 0.0 }
 0x265   : > { %v792_v56 = vmax.f32 %v754_v55, 0.0 }
 0x267   : > { %1568 = vmatprep.mubr.f32.mxu0 %v792_v56 }
 0x268   : > { %1569 = vmatmul.mubr.f32.gmra.mrb[46].mxu0 %v793_v54 }
 0x2ff   : > { %v1525_v59 = vpop.f32.mrb[16].mxu0 }
 0x300   : > { %v887_v60 = vadd.f32 %v1525_v59, %v2202_v43  ;;  %v881_v61 = vpop.f32.mrb[17].mxu0 }
 0x301   : > { %v882_v62 = vadd.f32 %v881_v61, %v2202_v43 }
 0x302   : > { %1041 = vst [vmem:[%s2208_s8 + $0x8] sm:$0xff] %v887_v60 }
 0x303   : > { %1040 = vst [vmem:[%s2208_s8] sm:$0xff] %v882_v62  ;;  %v1528_v38 = vpop.f32.mrb[18].mxu0 }
 0x304   : > { %v897_v40 = vadd.f32 %v1528_v38, %v2202_v43  ;;  %v891_v17 = vpop.f32.mrb[19].mxu0 }
 0x305   : > { %v892_v50 = vadd.f32 %v891_v17, %v2202_v43 }
 0x306   : > { %1043 = vst [vmem:[%s2208_s8 + $0x18] sm:$0xff] %v897_v40 }
 0x307   : > { %1042 = vst [vmem:[%s2208_s8 + $0x10] sm:$0xff] %v892_v50  ;;  %v1531_v63 = vpop.f32.mrb[20].mxu0 }
 0x308   : > { %v907_v0 = vadd.f32 %v1531_v63, %v2202_v43  ;;  %v901_v1 = vpop.f32.mrb[21].mxu0 }
 0x309   : > { %v902_v58 = vadd.f32 %v901_v1, %v2202_v43 }
 0x30a   : > { %1045 = vst [vmem:[%s2208_s8 + $0x28] sm:$0xff] %v907_v0 }
 0x30b   : > { %1044 = vst [vmem:[%s2208_s8 + $0x20] sm:$0xff] %v902_v58  ;;  %v1534_v3 = vpop.f32.mrb[22].mxu0 }
 0x30c   : > { %v917_v4 = vadd.f32 %v1534_v3, %v2202_v43  ;;  %v911_v5 = vpop.f32.mrb[23].mxu0 }
 0x30d   : > { %v912_v2 = vadd.f32 %v911_v5, %v2202_v43 }
 0x30e   : > { %1047 = vst [vmem:[%s2208_s8 + $0x38] sm:$0xff] %v917_v4 }
 0x30f   : > { %1046 = vst [vmem:[%s2208_s8 + $0x30] sm:$0xff] %v912_v2  ;;  %v1537_v6 = vpop.f32.mrb[24].mxu0 }
 0x310   : > { %v927_v7 = vadd.f32 %v1537_v6, %v2202_v43  ;;  %v921_v8 = vpop.f32.mrb[25].mxu0 }
 0x311   : > { %v922_v9 = vadd.f32 %v921_v8, %v2202_v43 }
 0x312   : > { %1049 = vst [vmem:[%s2208_s8 + $0x48] sm:$0xff] %v927_v7 }
 0x313   : > { %1048 = vst [vmem:[%s2208_s8 + $0x40] sm:$0xff] %v922_v9  ;;  %v1540_v10 = vpop.f32.mrb[26].mxu0 }
 0x314   : > { %v937_v11 = vadd.f32 %v1540_v10, %v2202_v43  ;;  %v931_v12 = vpop.f32.mrb[27].mxu0 }
 0x315   : > { %v932_v13 = vadd.f32 %v931_v12, %v2202_v43 }
 0x316   : > { %1051 = vst [vmem:[%s2208_s8 + $0x58] sm:$0xff] %v937_v11 }
 0x317   : > { %1050 = vst [vmem:[%s2208_s8 + $0x50] sm:$0xff] %v932_v13  ;;  %v1543_v14 = vpop.f32.mrb[28].mxu0 }
 0x318   : > { %v947_v15 = vadd.f32 %v1543_v14, %v2202_v43  ;;  %v941_v16 = vpop.f32.mrb[29].mxu0 }
 0x319   : > { %v942_v18 = vadd.f32 %v941_v16, %v2202_v43 }
 0x31a   : > { %1053 = vst [vmem:[%s2208_s8 + $0x68] sm:$0xff] %v947_v15 }
 0x31b   : > { %1052 = vst [vmem:[%s2208_s8 + $0x60] sm:$0xff] %v942_v18  ;;  %v1546_v19 = vpop.f32.mrb[30].mxu0 }
 0x31c   : > { %v957_v20 = vadd.f32 %v1546_v19, %v2202_v43  ;;  %v951_v41 = vpop.f32.mrb[31].mxu0 }
 0x31d   : > { %v952_v21 = vadd.f32 %v951_v41, %v2202_v43 }
 0x31e   : > { %1055 = vst [vmem:[%s2208_s8 + $0x78] sm:$0xff] %v957_v20 }
 0x31f   : > { %1054 = vst [vmem:[%s2208_s8 + $0x70] sm:$0xff] %v952_v21  ;;  %v1549_v22 = vpop.f32.mrb[32].mxu0 }
 0x320   : > { %v967_v23 = vadd.f32 %v1549_v22, %v2202_v43  ;;  %v961_v24 = vpop.f32.mrb[33].mxu0 }
 0x321   : > { %v962_v25 = vadd.f32 %v961_v24, %v2202_v43 }
 0x322   : > { %1057 = vst [vmem:[%s2208_s8 + $0x88] sm:$0xff] %v967_v23 }
 0x323   : > { %1056 = vst [vmem:[%s2208_s8 + $0x80] sm:$0xff] %v962_v25  ;;  %v1552_v26 = vpop.f32.mrb[34].mxu0 }
 0x324   : > { %v977_v27 = vadd.f32 %v1552_v26, %v2202_v43  ;;  %v971_v28 = vpop.f32.mrb[35].mxu0 }
 0x325   : > { %v972_v29 = vadd.f32 %v971_v28, %v2202_v43 }
 0x326   : > { %1059 = vst [vmem:[%s2208_s8 + $0x98] sm:$0xff] %v977_v27 }
 0x327   : > { %1058 = vst [vmem:[%s2208_s8 + $0x90] sm:$0xff] %v972_v29  ;;  %v1555_v30 = vpop.f32.mrb[36].mxu0 }
 0x328   : > { %v987_v31 = vadd.f32 %v1555_v30, %v2202_v43  ;;  %v981_v32 = vpop.f32.mrb[37].mxu0 }
 0x329   : > { %v982_v33 = vadd.f32 %v981_v32, %v2202_v43 }
 0x32a   : > { %1061 = vst [vmem:[%s2208_s8 + $0xa8] sm:$0xff] %v987_v31 }
 0x32b   : > { %1060 = vst [vmem:[%s2208_s8 + $0xa0] sm:$0xff] %v982_v33  ;;  %v1558_v34 = vpop.f32.mrb[38].mxu0 }
 0x32c   : > { %v997_v35 = vadd.f32 %v1558_v34, %v2202_v43  ;;  %v991_v36 = vpop.f32.mrb[39].mxu0 }
 0x32d   : > { %v992_v37 = vadd.f32 %v991_v36, %v2202_v43 }
 0x32e   : > { %1063 = vst [vmem:[%s2208_s8 + $0xb8] sm:$0xff] %v997_v35 }
 0x32f   : > { %1062 = vst [vmem:[%s2208_s8 + $0xb0] sm:$0xff] %v992_v37  ;;  %v1561_v39 = vpop.f32.mrb[40].mxu0 }
 0x330   : > { %v1007_v42 = vadd.f32 %v1561_v39, %v2202_v43  ;;  %v1001_v44 = vpop.f32.mrb[41].mxu0 }
 0x331   : > { %v1002_v45 = vadd.f32 %v1001_v44, %v2202_v43 }
 0x332   : > { %1065 = vst [vmem:[%s2208_s8 + $0xc8] sm:$0xff] %v1007_v42 }
 0x333   : > { %1064 = vst [vmem:[%s2208_s8 + $0xc0] sm:$0xff] %v1002_v45  ;;  %v1564_v47 = vpop.f32.mrb[42].mxu0 }
 0x334   : > { %v1017_v48 = vadd.f32 %v1564_v47, %v2202_v43  ;;  %v1011_v49 = vpop.f32.mrb[43].mxu0 }
 0x335   : > { %v1012_v51 = vadd.f32 %v1011_v49, %v2202_v43 }
 0x336   : > { %1067 = vst [vmem:[%s2208_s8 + $0xd8] sm:$0xff] %v1017_v48 }
 0x337   : > { %1066 = vst [vmem:[%s2208_s8 + $0xd0] sm:$0xff] %v1012_v51  ;;  %v1567_v46 = vpop.f32.mrb[44].mxu0 }
 0x338   : > { %v1027_v52 = vadd.f32 %v1567_v46, %v2202_v43  ;;  %v1021_v53 = vpop.f32.mrb[45].mxu0 }
 0x339   : > { %v1022_v55 = vadd.f32 %v1021_v53, %v2202_v43 }
 0x33a   : > { %1069 = vst [vmem:[%s2208_s8 + $0xe8] sm:$0xff] %v1027_v52 }
 0x33b   : > { %1068 = vst [vmem:[%s2208_s8 + $0xe0] sm:$0xff] %v1022_v55  ;;  %v1570_v56 = vpop.f32.mrb[46].mxu0 }
 0x33c   : > { %v1037_v54 = vadd.f32 %v1570_v56, %v2202_v43  ;;  %v1031_v57 = vpop.f32.mrb[47].mxu0 }
 0x33d   : > { %v1032_v59 = vadd.f32 %v1031_v57, %v2202_v43 }
 0x33e   : > { %1071 = vst [vmem:[%s2208_s8 + $0xf8] sm:$0xff] %v1037_v54 }
 0x33f   : > { %1070 = vst [vmem:[%s2208_s8 + $0xf0] sm:$0xff] %v1032_v59 }
 0x340   : > { %1815 = shalt.err (!%p1812_p7)
}
 0x341   : > { %s1816_s30 = scalar_lea.hbm %s2274_s11, 4096  ;;  %s1820_s10 = scalar_lea.hbm %s2326_s3, 8192 }
 0x342   : > { %p1817_p9 = scmp.ne.s32.totalorder %s2274_s11, %s1816_s30  ;;  %p1821_p5 = scmp.lt.u32.totalorder %s2274_s11, %s2326_s3 }
 0x343   : > { %p1822_p11 = scmp.lt.u32.totalorder %s1820_s10, %s1816_s30  ;;  %p1824_p4 = scmp.lt.u32.totalorder %s1816_s30, %s2274_s11 }
 0x344   : > { %p1818_p1 = pnand %p1817_p9, %p1995_p12 }
 0x345   : > { %p1823_p2 = por %p1822_p11, %p1821_p5 }
 0x346   : > { %p1819_p0 = pneg %p1818_p1 }
 0x347   : > { %p1825_p6 = por %p1824_p4, %p1823_p2 }
 0x349   : > { %p1826_p8 = pnand %p1825_p6, %p1819_p0 }
 0x34b   : > { %1829 = shalt.err (!%p1826_p8)
}
 0x34c   : > { %s1879_s20 = smov 128   ;;  %s1880_s8 = smov 8  }
 0x34d   : > { %1689 = dma.vmem_to_hbm [thread:$0]  (%p1995_p12), %s2276_s4, 4096, %s2274_s11, %s1073_s16, %s1879_s20, %s1879_s20, %s1880_s8  }
 0x34e PF: > { %s1101_s9 = sand.u32 1, %s1860_s12   ;;  %p2341_p10 = scmp.ne.s32.totalorder %s2331_s19, 0 }
 0x34f   : > { %p2342_p13 = scmp.ge.s32.totalorder %s1872_s15, 2  ;;  %s1102_s25 = scalar_lea.sflag [#allocation4], %s1101_s9 }
 0x351   : > { %p1700_p3 = pnand %p2342_p13, %p2341_p10 }
 0x353   : > { %1855 = dma.done.wait (!%p1700_p3), %s1102_s25, 4096  }
 0x354   : > { %1857 = vsyncadd (!%p1700_p3), %s1102_s25, 4294963200  ;;  %p17_p7 = scmp.ge.s32.totalorder %s1957_s24, 4   ;;  %s2343_s12 = smov %s1864_s13 }
 0x355   : > { %s2344_s13 = smov %s1868_s14  ;;  %s2345_s14 = smov %s1991_s17 }
 0x356   : > { %s2346_s15 = smov %s1957_s24  ;;  %19 = sbr.rel (!%p17_p7) target bundleno = 6 (0x6), region = 83 }
 0x35d   :  { %1107 = vsyncpa [#allocation3], 1 }
 0x35e   :  { %1109 = vsyncpa [#allocation3 + $0x1], 1 }
 0x35f   :  { %1110 = vsyncpa [#allocation6], 1 }
 0x360   :  { %1111 = vsyncpa [#allocation4], 1 }
 0x361   :  { %1113 = vsyncpa [#allocation4 + $0x1], 1 }

</bundles_post_ra>
